<compile_context>
chip_gen: v5e
topology: v5e:2x2
jax: 0.10.0
libtpu: 0.0.40
codegen_flags: <defaults>
</compile_context>

<pallas_src>
import jax
import jax.numpy as jnp
from jax import lax
from jax.experimental import pallas as pl
from jax.experimental.pallas import tpu as pltpu


def _round_up(x: int, m: int) -> int:
    return ((x + m - 1) // m) * m


def _cdiv(a: int, b: int) -> int:
    return (a + b - 1) // b


def _pick_tile(dim_rounded: int, candidates) -> int:
    """Largest candidate that divides dim_rounded exactly (avoids a wrapper-side
    pad copy of the big weight); else largest candidate that fits."""
    for c in candidates:
        if c <= dim_rounded and dim_rounded % c == 0:
            return c
    for c in candidates:
        if c <= dim_rounded:
            return c
    return dim_rounded


def _lmhead_kernel(x_ref, w_ref, b_ref, o_ref, acc_ref):
    """Multi-k path: one (tm, tn) output tile, reduction over innermost k axis.

    x_ref:   [tm, tk]  activations (bf16)
    w_ref:   [tn, tk]  weight, torch nn.Linear layout (bf16)
    b_ref:   [1,  tn]  bias (f32)
    o_ref:   [tm, tn]  output (bf16)
    acc_ref: [tm, tn]  f32 accumulator (VMEM scratch, persists across k steps)
    """
    k = pl.program_id(2)

    @pl.when(k == 0)
    def _():
        acc_ref[...] = jnp.zeros_like(acc_ref)

    acc_ref[...] += lax.dot_general(
        x_ref[...].astype(jnp.bfloat16),
        w_ref[...].astype(jnp.bfloat16),
        dimension_numbers=(((1,), (1,)), ((), ())),  # x[m,k] . w[n,k] -> [m,n]
        preferred_element_type=jnp.float32,
    )

    @pl.when(k == pl.num_programs(2) - 1)
    def _():
        o_ref[...] = (acc_ref[...] + b_ref[...].astype(jnp.float32)).astype(
            o_ref.dtype
        )


def _lmhead_kernel_1k(x_ref, w_ref, b_ref, o_ref):
    """Single-k fast path (embed fits one tk tile): no accumulator scratch."""
    acc = lax.dot_general(
        x_ref[...].astype(jnp.bfloat16),
        w_ref[...].astype(jnp.bfloat16),
        dimension_numbers=(((1,), (1,)), ((), ())),
        preferred_element_type=jnp.float32,
    )
    o_ref[...] = (acc + b_ref[...].astype(jnp.float32)).astype(o_ref.dtype)


def lm_head_forward(x, weight, bias, *, out_dtype=jnp.bfloat16):
    """LMHead forward.

    Args:
      x:      [batch, seq, embed]  activations (any float dtype).
      weight: [vocab, embed]       torch nn.Linear layout (NOT pre-transposed).
                                   Pass it already in bf16 for a persistent
                                   param so no per-call cast copy is paid.
      bias:   [vocab]

    Returns:
      [batch, seq, vocab] in bfloat16 (half-precision autocast analog).
    """
    batch, seq, embed = x.shape
    vocab, embed_w = weight.shape
    assert embed_w == embed, "weight must be [vocab, embed] (torch layout)"
    assert bias.shape == (vocab,)

    M, K, N = batch * seq, embed, vocab
    Kr = _round_up(K, 128)
    Nr = _round_up(N, 128)

    # ---- tile selection ----
    if M <= 512:
        # decode / small-M: single i step, weight streamed exactly once;
        # grow tn/tk to amortize per-grid-step overhead.
        tm = _round_up(M, 16)
        tn_cands = (2048, 1024, 512, 256, 128)
    else:
        # large-M: maximize tm (up to 1024) to minimize weight re-streaming,
        # then minimize M-padding among tm values achieving that step count.
        steps = _cdiv(M, 1024)
        tm = min(_round_up(_cdiv(M, steps), 64), 1024)
        tn_cands = (1024, 512, 256, 128)
    tk = _pick_tile(Kr, (2048, 1024, 512, 256, 128))
    tn = _pick_tile(Nr, tn_cands)

    Mp = _round_up(M, tm)
    Kp = _round_up(Kr, tk)
    Np = _round_up(Nr, tn)
    gi, gj, gk = Mp // tm, Np // tn, Kp // tk

    # ---- operand preparation: bf16 streams (autocast analog), minimal padding
    x2 = x.reshape(M, K)
    if x2.dtype != jnp.bfloat16:
        x2 = x2.astype(jnp.bfloat16)
    w2 = weight
    if w2.dtype != jnp.bfloat16:
        w2 = w2.astype(jnp.bfloat16)
    b2 = bias.reshape(1, N).astype(jnp.float32)

    if (Mp, Kp) != (M, K):
        x2 = jnp.pad(x2, ((0, Mp - M), (0, Kp - K)))
    if (Np, Kp) != (N, K):
        w2 = jnp.pad(w2, ((0, Np - N), (0, Kp - K)))
    if Np != N:
        b2 = jnp.pad(b2, ((0, 0), (0, Np - N)))

    cost = pl.CostEstimate(
        flops=2 * M * N * K,
        transcendentals=0,
        bytes_accessed=(
            2 * Mp * Kp * gj            # x (bf16), re-read once per j step
            + 2 * Np * Kp * gi          # weight (bf16), re-read once per i step
            + 4 * Np                    # bias (f32)
            + jnp.dtype(out_dtype).itemsize * Mp * Np
        ),
    )

    compiler_params = pltpu.CompilerParams(
        # j (vocab) leads so megacore sharding splits the weight across the two
        # TensorCores on v7x instead of duplicating its HBM stream.
        dimension_semantics=("parallel", "parallel")
        + (("arbitrary",) if gk > 1 else ()),
        vmem_limit_bytes=48 * 1024 * 1024,
    )

    if gk == 1:
        out = pl.pallas_call(
            _lmhead_kernel_1k,
            out_shape=jax.ShapeDtypeStruct((Mp, Np), out_dtype),
            grid_spec=pltpu.PrefetchScalarGridSpec(
                num_scalar_prefetch=0,
                grid=(gj, gi),
                in_specs=[
                    pl.BlockSpec((tm, tk), lambda j, i: (i, 0)),  # x tile
                    pl.BlockSpec((tn, tk), lambda j, i: (j, 0)),  # weight tile
                    pl.BlockSpec((1, tn), lambda j, i: (0, j)),   # bias tile
                ],
                out_specs=pl.BlockSpec((tm, tn), lambda j, i: (i, j)),
            ),
            compiler_params=compiler_params,
            cost_estimate=cost,
        )(x2, w2, b2)
    else:
        out = pl.pallas_call(
            _lmhead_kernel,
            out_shape=jax.ShapeDtypeStruct((Mp, Np), out_dtype),
            grid_spec=pltpu.PrefetchScalarGridSpec(
                num_scalar_prefetch=0,
                grid=(gj, gi, gk),
                in_specs=[
                    pl.BlockSpec((tm, tk), lambda j, i, k: (i, k)),  # x tile
                    pl.BlockSpec((tn, tk), lambda j, i, k: (j, k)),  # weight
                    pl.BlockSpec((1, tn), lambda j, i, k: (0, j)),   # bias
                ],
                out_specs=pl.BlockSpec((tm, tn), lambda j, i, k: (i, j)),
                scratch_shapes=[pltpu.VMEM((tm, tn), jnp.float32)],
            ),
            compiler_params=compiler_params,
            cost_estimate=cost,
        )(x2, w2, b2)

    if (Mp, Np) != (M, N):
        out = out[:M, :N]
    return out.reshape(batch, seq, vocab)


def _reference(x, weight, bias):
    """Plain-JAX reference with matching bf16-operand / f32-accum semantics."""
    b, s, e = x.shape
    v = weight.shape[0]
    y = jnp.dot(
        x.astype(jnp.bfloat16).reshape(-1, e),
        weight.astype(jnp.bfloat16).T,
        preferred_element_type=jnp.float32,
    ) + bias.astype(jnp.float32)
    return y.astype(jnp.bfloat16).reshape(b, s, v)


def _check(y, ref):
    assert jnp.allclose(
        y.astype(jnp.float32), ref.astype(jnp.float32), atol=2e-2, rtol=2e-2
    )


if __name__ == "__main__":
    key = jax.random.PRNGKey(0)
    k1, k2, k3 = jax.random.split(key, 3)

    # --- 1) small shapes implied by the module (single-k fast path) ---
    batch, seq, embed, vocab = 2, 8, 32, 256
    kx, kw, kb = jax.random.split(k1, 3)
    x = jax.random.normal(kx, (batch, seq, embed), dtype=jnp.float32)
    bound = 1.0 / (embed ** 0.5)
    weight = jax.random.uniform(kw, (vocab, embed), jnp.float32, -bound, bound)
    bias = jax.random.uniform(kb, (vocab,), jnp.float32, -bound, bound)
    y = jax.block_until_ready(lm_head_forward(x, weight, bias))
    assert y.shape == (batch, seq, vocab)
    _check(y, _reference(x, weight, bias))

    # --- 2) ragged vocab/embed (exercises padding + multi-j grid) ---
    b2_, s2_, e2_, v2_ = 2, 48, 200, 2500
    kx2, kw2, kb2 = jax.random.split(k2, 3)
    x_b = jax.random.normal(kx2, (b2_, s2_, e2_), dtype=jnp.float32)
    bound2 = 1.0 / (e2_ ** 0.5)
    w_b = jax.random.uniform(kw2, (v2_, e2_), jnp.float32, -bound2, bound2)
    bias_b = jax.random.uniform(kb2, (v2_,), jnp.float32, -bound2, bound2)
    y_b = jax.block_until_ready(lm_head_forward(x_b, w_b, bias_b))
    assert y_b.shape == (b2_, s2_, v2_)
    _check(y_b, _reference(x_b, w_b, bias_b))

    # --- 3) multi-k reduction path with f32 accumulator (bf16 weight input) ---
    b3_, s3_, e3_, v3_ = 1, 64, 384, 768
    kx3, kw3, kb3 = jax.random.split(k3, 3)
    x_c = jax.random.normal(kx3, (b3_, s3_, e3_), dtype=jnp.float32)
    bound3 = 1.0 / (e3_ ** 0.5)
    w_c = jax.random.uniform(
        kw3, (v3_, e3_), jnp.float32, -bound3, bound3
    ).astype(jnp.bfloat16)  # persistent-param format: no per-call cast copy
    bias_c = jax.random.uniform(kb3, (v3_,), jnp.float32, -bound3, bound3)
    y_c = jax.block_until_ready(lm_head_forward(x_c, w_c, bias_c))
    assert y_c.shape == (b3_, s3_, v3_)
    _check(y_c, _reference(x_c, w_c, bias_c))

    print("KERNEL_OK")
</pallas_src>

<mosaic_0001>
module attributes {stable_mosaic.version = 11 : i64} {
  func.func @_lmhead_kernel_1k(%arg0: i32, %arg1: i32, %arg2: memref<16x128xbf16, #tpu.memory_space<vmem>>, %arg3: memref<256x128xbf16, #tpu.memory_space<vmem>>, %arg4: memref<1x256xf32, #tpu.memory_space<vmem>>, %arg5: memref<16x256xbf16, #tpu.memory_space<vmem>>) attributes {dimension_semantics = [#tpu.dimension_semantics<parallel>, #tpu.dimension_semantics<parallel>], iteration_bounds = array<i64: 1, 1>, scalar_prefetch = 0 : i64, scratch_operands = 0 : i64, tpu.core_type = #tpu.core_type<tc>, window_params = [{transform_indices = @transform_0, window_bounds = array<i64: 16, 128>}, {transform_indices = @transform_1, window_bounds = array<i64: 256, 128>}, {transform_indices = @transform_2, window_bounds = array<i64: 1, 256>}, {transform_indices = @transform_3, window_bounds = array<i64: 16, 256>}]} {
    %c0 = arith.constant 0 : index
    %c0_0 = arith.constant 0 : index
    %0 = vector.load %arg2[%c0, %c0_0] : memref<16x128xbf16, #tpu.memory_space<vmem>>, vector<16x128xbf16>
    %c0_1 = arith.constant 0 : index
    %c0_2 = arith.constant 0 : index
    %1 = vector.load %arg3[%c0_1, %c0_2] : memref<256x128xbf16, #tpu.memory_space<vmem>>, vector<256x128xbf16>
    %cst = arith.constant dense<0.000000e+00> : vector<16x256xf32>
    %2 = tpu.matmul %0, %1, %cst {dimension_numbers = #tpu.dot_dimension_numbers<[1], [1], [0], [0], [0, 0, 1, 0], [], []>} : vector<16x128xbf16>, vector<256x128xbf16>, vector<16x256xf32> -> vector<16x256xf32>
    %c0_3 = arith.constant 0 : index
    %c0_4 = arith.constant 0 : index
    %3 = vector.load %arg4[%c0_3, %c0_4] : memref<1x256xf32, #tpu.memory_space<vmem>>, vector<1x256xf32>
    %4 = vector.broadcast %3 : vector<1x256xf32> to vector<16x256xf32>
    %5 = arith.addf %2, %4 : vector<16x256xf32>
    %6 = arith.truncf %5 : vector<16x256xf32> to vector<16x256xbf16>
    %c0_5 = arith.constant 0 : index
    %c0_6 = arith.constant 0 : index
    %7 = vector.load %arg5[%c0_5, %c0_6] : memref<16x256xbf16, #tpu.memory_space<vmem>>, vector<16x256xbf16>
    tpu.vector_store %arg5[%c0_5, %c0_6], %6 {strides = array<i32>} : memref<16x256xbf16, #tpu.memory_space<vmem>>, vector<16x256xbf16>,
    return
  }
  func.func @transform_0(%arg0: i32, %arg1: i32) -> (i32, i32) {
    %c0_i32 = arith.constant 0 : i32
    %c0_i32_0 = arith.constant 0 : i32
    return %arg1, %c0_i32 : i32, i32
  }
  func.func @transform_1(%arg0: i32, %arg1: i32) -> (i32, i32) {
    %c0_i32 = arith.constant 0 : i32
    %c0_i32_0 = arith.constant 0 : i32
    return %arg0, %c0_i32 : i32, i32
  }
  func.func @transform_2(%arg0: i32, %arg1: i32) -> (i32, i32) {
    %c0_i32 = arith.constant 0 : i32
    %c0_i32_0 = arith.constant 0 : i32
    return %c0_i32, %arg0 : i32, i32
  }
  func.func @transform_3(%arg0: i32, %arg1: i32) -> (i32, i32) {
    %c0_i32 = arith.constant 0 : i32
    return %arg1, %arg0 : i32, i32
  }
}

</mosaic_0001>

<bundles_post_ra>
// kernel: tpu_custom_call.1
= control target key start
LH: loop header
LB: loop body
LE: loop exit
PB: predicated region body
PF: predicated region fallthrough
CT: control target
= control target key end

     0   :  { %8 = vsyncpa [#allocation3], 0  ;;  %s489_s0 = inlined_call_operand.hbm [shape: bf16[16,128], index: 0, kind: input, shape index: {}]   ;;  %s490_s1 = inlined_call_operand.hbm [shape: bf16[256,128], index: 1, kind: input, shape index: {}]   ;;  %s491_s2 = inlined_call_operand.hbm [shape: f32[1,256], index: 2, kind: input, shape index: {}]   ;;  %s492_s3 = inlined_call_operand.hbm [shape: bf16[16,256], index: 3, kind: output, shape index: {}]  }
   0x1   :  { %9 = vsyncpa [#allocation6], 0 }
   0x2   :  { %10 = vsyncpa [#allocation4], 0  ;;  %s28_s14 = sshll.u32 %s490_s1, 4  ;;  %s449_s15 = smov [#allocation5]   ;;  %s29_s14 = int_to_ptr.hbm [resolvable:$true] %s28_s14 }
   0x3   :  { %s30_s16 = sshll.u32 %s449_s15, 4  ;;  %s15_s19 = sshll.u32 %s489_s0, 4  ;;  %s31_s16 = int_to_ptr.vmem [resolvable:$true] %s30_s16  ;;  %s16_s19 = int_to_ptr.hbm [resolvable:$true] %s15_s19 }
   0x4   :  { %s450_s20 = smov 64   ;;  %s451_s21 = smov 4  }
   0x5   :  { %36 = dma.hbm_to_vmem [thread:$0]  %s29_s14, 2048, %s31_s16, [#allocation6], %s450_s20, %s450_s20, %s451_s21  }
   0x6   :  { %s452_s22 = smov [#allocation2]   ;;  %s42_s26 = sshll.u32 %s491_s2, 4  ;;  %s43_s26 = int_to_ptr.hbm [resolvable:$true] %s42_s26 }
   0x7   :  { %s17_s23 = sshll.u32 %s452_s22, 4  ;;  %s453_s1 = smov [#allocation7]   ;;  %s18_s23 = int_to_ptr.vmem [resolvable:$true] %s17_s23 }
   0x8   :  { %23 = dma.hbm_to_vmem [thread:$0]  %s16_s19, 128, %s18_s23, [#allocation3], %s450_s20, %s450_s20, %s451_s21  }
   0x9   :  { %s44_s27 = sshll.u32 %s453_s1, 4  ;;  %s45_s27 = int_to_ptr.vmem [resolvable:$true] %s44_s27 }
   0xa   :  { %47 = dma.hbm_to_vmem [thread:$0]  %s43_s26, 32, %s45_s27, [#allocation6]  }
   0xb   :  { %443 = dma.done.wait [#allocation3], 128  }
   0xc   :  { %444 = vsyncadd [#allocation3], 4294967168 }
   0xd   :  { %445 = dma.done.wait [#allocation6], 2080  }
   0xe   :  { %446 = vsyncadd [#allocation6], 4294965216  ;;  %v330_v0 = vld [vmem:[#allocation5 + $0x38] sm:$0xff]  ;;  %v329_v2 = vld [vmem:[#allocation5 + $0x30] sm:$0xff]  ;;  %s454_s0 = smov [#allocation8]   ;;  %s240_s30 = sshll.u32 %s492_s3, 4  ;;  %s241_s30 = int_to_ptr.hbm [resolvable:$true] %s240_s30 }
   0xf   :  { %v338_v1 = vld [vmem:[#allocation5 + $0x78] sm:$0xff]  ;;  %202 = vmatpush.bf16.xpose.msra.mxu0 %v330_v0  ;;  %v337_v3 = vld [vmem:[#allocation5 + $0x70] sm:$0xff]  ;;  %v328_v4 = vld [vmem:[#allocation5 + $0x28] sm:$0xff]  ;;  %s238_s2 = sshll.u32 %s454_s0, 4  ;;  %s455_s4 = smov 128   ;;  %s239_s2 = int_to_ptr.vmem [resolvable:$true] %s238_s2 }
  0x10   :  { %216 = vmatpush.bf16.xpose.msra.mxu1 %v338_v1  ;;  %v336_v5 = vld [vmem:[#allocation5 + $0x68] sm:$0xff]  ;;  %v327_v6 = vld [vmem:[#allocation5 + $0x20] sm:$0xff]  ;;  %v326_v8 = vld [vmem:[#allocation5 + $0x18] sm:$0xff]  ;;  %s456_s5 = smov 8  }
  0x11   :  { %v335_v7 = vld [vmem:[#allocation5 + $0x60] sm:$0xff]  ;;  %v334_v9 = vld [vmem:[#allocation5 + $0x58] sm:$0xff]  ;;  %v325_v10 = vld [vmem:[#allocation5 + $0x10] sm:$0xff] }
  0x12   :  { %v333_v11 = vld [vmem:[#allocation5 + $0x50] sm:$0xff]  ;;  %v324_v12 = vld [vmem:[#allocation5 + $0x8] sm:$0xff]  ;;  %v323_v14 = vld [vmem:[#allocation5] sm:$0xff] }
  0x13   :  { %v332_v13 = vld [vmem:[#allocation5 + $0x48] sm:$0xff]  ;;  %v331_v15 = vld [vmem:[#allocation5 + $0x40] sm:$0xff]  ;;  %v322_v16 = vld [vmem:[#allocation2] sm:$0xff] }
  0x14   :  { %v94_v17 = vld [vmem:[#allocation7] sm:$0x3] }
  0x15   :  { %v96_v18 = vperm.slane %v94_v17, 0  ;;  %v97_v19 = vperm.slane %v94_v17, 1 }
  0x17   :  { %203 = vmatpush.bf16.xpose.msra.mxu0 %v329_v2 }
  0x18   :  { %217 = vmatpush.bf16.xpose.msra.mxu1 %v337_v3 }
  0x1f   :  { %204 = vmatpush.bf16.xpose.msra.mxu0 %v328_v4 }
  0x20   :  { %218 = vmatpush.bf16.xpose.msra.mxu1 %v336_v5 }
  0x27   :  { %205 = vmatpush.bf16.xpose.msra.mxu0 %v327_v6 }
  0x28   :  { %219 = vmatpush.bf16.xpose.msra.mxu1 %v335_v7 }
  0x2f   :  { %206 = vmatpush.bf16.xpose.msra.mxu0 %v326_v8 }
  0x30   :  { %220 = vmatpush.bf16.xpose.msra.mxu1 %v334_v9 }
  0x37   :  { %207 = vmatpush.bf16.xpose.msra.mxu0 %v325_v10 }
  0x38   :  { %221 = vmatpush.bf16.xpose.msra.mxu1 %v333_v11 }
  0x3f   :  { %208 = vmatpush.bf16.xpose.msra.mxu0 %v324_v12 }
  0x40   :  { %222 = vmatpush.bf16.xpose.msra.mxu1 %v332_v13 }
  0x47   :  { %209 = vmatpush.bf16.xpose.msra.mxu0 %v323_v14 }
  0x48   :  { %223 = vmatpush.bf16.xpose.msra.mxu1 %v331_v15 }
  0x4e   :  { %210 = vmatmul.bf16.vlgmr.msra.gmra.mxu0 %v322_v16 }
  0x4f   :  { %224 = vmatmul.bf16.vlgmr.msra.gmra.mxu1 %v322_v16 }
  0xcb   :  { %v211_v20 = vpop.f32.mrf.mxu0 }
  0xcc   :  { %v225_v21 = vpop.f32.mrf.mxu1  ;;  %v212_v22 = vadd.f32 %v211_v20, %v96_v18 }
  0xcd   :  { %v226_v23 = vadd.f32 %v225_v21, %v97_v19 }
  0xcf   :  { %v230_v24 = vpack.c.bf16 %v226_v23, %v212_v22 }
  0xd1   :  { %232 = vst [vmem:[#allocation8] sm:$0xff] %v230_v24 }
  0xd3   :  { %v213_v25 = vpop.f32.mrf.mxu0 }
  0xd4   :  { %v227_v26 = vpop.f32.mrf.mxu1  ;;  %v214_v27 = vadd.f32 %v213_v25, %v96_v18 }
  0xd5   :  { %v228_v28 = vadd.f32 %v227_v26, %v97_v19 }
  0xd7   :  { %v231_v29 = vpack.c.bf16 %v228_v28, %v214_v27 }
  0xd9   :  { %233 = vst [vmem:[#allocation8 + $0x8] sm:$0xff] %v231_v29 }
  0xda   :  { %246 = dma.vmem_to_hbm [thread:$0]  %s239_s2, 256, %s241_s30, [#allocation4], %s455_s4, %s455_s4, %s456_s5  }
  0xdb   :  { %447 = dma.done.wait [#allocation4], 256  }
  0xdc   :  { %448 = vsyncadd [#allocation4], 4294967040 }
  0xdd   :  { %251 = vsyncpa [#allocation3], 1 }
  0xde   :  { %252 = vsyncpa [#allocation6], 1 }
  0xdf   :  { %253 = vsyncpa [#allocation4], 1 }

</bundles_post_ra>
